<compile_context>
chip_gen: v7x
topology: tpu7x:2x2x1
jax: 0.10.0
libtpu: 0.0.40
codegen_flags: <defaults>
</compile_context>

<pallas_src>
import functools

import jax
import jax.numpy as jnp
import numpy as np
from jax.experimental import pallas as pl
from jax.experimental.pallas import tpu as pltpu


def _round_up(v, m):
    return ((v + m - 1) // m) * m


def _cores_per_device():
    """Best-effort TensorCores-per-device count.

    Gates the 'force >= 2 grid steps' tile split: it only buys parallelism on
    multi-TensorCore parts; on single-TC parts it is pure per-step overhead.
    """
    try:
        d = jax.devices()[0]
        nc = getattr(d, "num_cores", None)
        if nc:
            return int(nc)
        kind = str(getattr(d, "device_kind", "")).lower()
        if any(tag in kind for tag in ("v4", "v5p", "7x", "v7")):
            return 2
    except Exception:
        pass
    return 1


def _cgmm0_kernel(x_ref, bp_ref, out_ref, *, C, G, M):
    """One node tile; node axis in lanes (lane-dense everywhere).

    x_ref   : (1, TN)       int32  node labels (padded columns carry label 0)
    bp_ref  : (C*G, M)      f32    softmax(B)*softmax(Pi), row index = c*G + g
    out_ref : (C*G + G, TN) f32    rows [0, C*G)      -> posterior (row c*G+g)
                                   rows [C*G, C*G+G)  -> log-likelihood
    """
    CG = C * G
    x = x_ref[...]                                   # (1, TN) int32
    tn = x.shape[1]

    # Label "gather" as an exact-f32 VPU select-accumulate over the M symbols.
    # (M is small; a one-hot MXU matmul here is pure fill/drain latency.)
    gathered = jnp.zeros((CG, tn), jnp.float32)
    for m in range(M):
        col = bp_ref[:, m:m + 1]                     # (CG, 1)
        gathered = jnp.where(x == m, col, gathered)  # lane-dense select

    unnorm = gathered + 1e-12                        # (CG, TN)

    # Reduce over C: sublane groups of G rows, fully unrolled vector adds
    # (no XLU cross-lane reduction needed in this layout).
    s = unnorm[0:G, :]
    for c in range(1, C):
        s = s + unnorm[c * G:(c + 1) * G, :]         # (G, TN)

    inv = pl.reciprocal(s, approx=False)             # exact (keeps tolerance)

    # Assemble posterior row-groups + likelihood rows into one lane-dense
    # slab: a single unmasked full-width store / one writeback DMA per tile.
    rows = [unnorm[c * G:(c + 1) * G, :] * inv for c in range(C)]
    rows.append(jnp.log(s))
    out_ref[...] = jnp.concatenate(rows, axis=0)     # (CG + G, TN)


@functools.partial(jax.jit, static_argnames=("tn",))
def cgmm_layer0_forward(x, lambda_B, lambda_Pi, *, tn=1024):
    """Pallas forward of CGMMLayer_0.

    x:         (N,) int32 node labels in [0, M)
    lambda_B:  (C, M, n_gen) float32 unnormalised emission parameters
    lambda_Pi: (C, n_gen)    float32 unnormalised priors
    returns (likelihood (N, n_gen), posterior (N, C, n_gen))
    """
    N = x.shape[0]
    C, M, G = lambda_B.shape
    CG = C * G

    # --- parameter softmaxes: computed once, outside the node-tiled kernel ---
    B = jax.nn.softmax(lambda_B.astype(jnp.float32), axis=1)     # (C, M, G)
    Pi = jax.nn.softmax(lambda_Pi.astype(jnp.float32), axis=0)   # (C, G)
    # Fold Pi into B once: unnorm[n,c,g] = (B*Pi)[c, x[n], g] + eps  (exact).
    BP = B * Pi[:, None, :]                                      # (C, M, G)
    BP_T = jnp.transpose(BP, (0, 2, 1)).reshape(CG, M)           # (C*G, M)

    # --- node tile selection: lane-dense (multiple of 128), large tiles ------
    cores = _cores_per_device()
    tn_eff = _round_up(min(int(tn), _round_up(N, 128)), 128)
    if cores > 1:
        # Keep at least `cores` grid steps (when N allows) so the parallel
        # node axis can shard across TensorCores on multi-TC parts.
        while _round_up(N, tn_eff) // tn_eff < cores and tn_eff > 128:
            tn_eff = _round_up(max(128, tn_eff // 2), 128)
    Np = _round_up(N, tn_eff)

    x_row = x.astype(jnp.int32).reshape(1, N)
    if Np != N:
        x_row = jnp.pad(x_row, ((0, 0), (0, Np - N)))            # pad label 0

    kernel = functools.partial(_cgmm0_kernel, C=C, G=G, M=M)

    out = pl.pallas_call(
        kernel,
        out_shape=jax.ShapeDtypeStruct((CG + G, Np), jnp.float32),
        grid_spec=pltpu.PrefetchScalarGridSpec(
            num_scalar_prefetch=0,
            grid=(Np // tn_eff,),
            in_specs=[
                pl.BlockSpec((1, tn_eff), lambda i: (0, i)),     # x lane tile
                pl.BlockSpec((CG, M), lambda i: (0, 0)),         # resident B*Pi
            ],
            out_specs=pl.BlockSpec((CG + G, tn_eff), lambda i: (0, i)),
        ),
        compiler_params=pltpu.CompilerParams(
            dimension_semantics=("parallel",),
            vmem_limit_bytes=32 * 1024 * 1024,
        ),
    )(x_row, BP_T)

    # Slice / un-transpose the fused slab back to the torch layout.
    posterior = out[:CG, :N].reshape(C, G, N).transpose(2, 0, 1)  # (N, C, G)
    likelihood = out[CG:, :N].T                                   # (N, G)
    return likelihood, posterior


def _reference(x, lambda_B, lambda_Pi):
    """Pure-JAX reference mirroring the torch FirstLayerF.forward."""
    B = jax.nn.softmax(lambda_B, axis=1)                  # (C, M, G)
    Pi = jax.nn.softmax(lambda_Pi, axis=0)                # (C, G)
    gathered = jnp.transpose(B[:, x, :], (1, 0, 2))       # (N, C, G)
    unnorm = gathered * Pi[None] + 1e-12
    posterior = unnorm / unnorm.sum(1, keepdims=True)
    return jnp.log(unnorm.sum(1)), posterior


# TODO(synk): FirstLayerF.backward (the hand-written autograd rule) is not
# implemented; this script covers the forward pass only.

if __name__ == "__main__":
    # Module hyper-params (deterministic, synthetic, small)
    C, M, n_gen = 4, 8, 8
    N = 50  # not a tile multiple on purpose: exercises lane padding

    key = jax.random.PRNGKey(0)
    kB, kPi, kx = jax.random.split(key, 3)
    # nn.init.uniform_ defaults to U(0, 1)
    lambda_B = jax.random.uniform(kB, (C, M, n_gen), dtype=jnp.float32)
    lambda_Pi = jax.random.uniform(kPi, (C, n_gen), dtype=jnp.float32)
    x = jax.random.randint(kx, (N,), 0, M, dtype=jnp.int32)

    lik, post = cgmm_layer0_forward(x, lambda_B, lambda_Pi)
    jax.block_until_ready((lik, post))

    lik_ref, post_ref = _reference(x, lambda_B, lambda_Pi)
    np.testing.assert_allclose(np.asarray(lik), np.asarray(lik_ref),
                               rtol=1e-4, atol=1e-5)
    np.testing.assert_allclose(np.asarray(post), np.asarray(post_ref),
                               rtol=1e-4, atol=1e-5)

    print("KERNEL_OK")
</pallas_src>

<mosaic_0001>
module attributes {stable_mosaic.version = 11 : i64} {
  func.func @_cgmm0_kernel(%arg0: i32, %arg1: memref<1x128xi32, #tpu.memory_space<vmem>>, %arg2: memref<32x8xf32, #tpu.memory_space<vmem>>, %arg3: memref<40x128xf32, #tpu.memory_space<vmem>>) attributes {dimension_semantics = [#tpu.dimension_semantics<parallel>], iteration_bounds = array<i64: 1>, scalar_prefetch = 0 : i64, scratch_operands = 0 : i64, tpu.core_type = #tpu.core_type<tc>, window_params = [{transform_indices = @transform_0, window_bounds = array<i64: 1, 128>}, {pipeline_mode = #tpu.pipeline_mode<synchronous>, transform_indices = @transform_1, window_bounds = array<i64: 32, 8>}, {transform_indices = @transform_2, window_bounds = array<i64: 40, 128>}]} {
    %c0 = arith.constant 0 : index
    %c0_0 = arith.constant 0 : index
    %0 = vector.load %arg1[%c0, %c0_0] : memref<1x128xi32, #tpu.memory_space<vmem>>, vector<1x128xi32>
    %cst = arith.constant 0.000000e+00 : f32
    %1 = vector.broadcast %cst : f32 to vector<32x128xf32>
    %c0_1 = arith.constant 0 : index
    %c0_2 = arith.constant 0 : index
    %2 = vector.load %arg2[%c0_1, %c0_2] : memref<32x8xf32, #tpu.memory_space<vmem>>, vector<32x1xf32>
    %c0_i32 = arith.constant 0 : i32
    %3 = vector.broadcast %c0_i32 : i32 to vector<1x128xi32>
    %4 = arith.cmpi eq, %0, %3 : vector<1x128xi32>
    %5 = vector.shape_cast %4 : vector<1x128xi1> to vector<1x128xi1>
    %6 = vector.broadcast %5 : vector<1x128xi1> to vector<32x128xi1>
    %7 = vector.shape_cast %2 : vector<32x1xf32> to vector<32x1xf32>
    %8 = vector.broadcast %7 : vector<32x1xf32> to vector<32x128xf32>
    %9 = arith.select %6, %8, %1 : vector<32x128xi1>, vector<32x128xf32>
    %c0_3 = arith.constant 0 : index
    %c1 = arith.constant 1 : index
    %10 = vector.load %arg2[%c0_3, %c1] : memref<32x8xf32, #tpu.memory_space<vmem>>, vector<32x1xf32>
    %c1_i32 = arith.constant 1 : i32
    %11 = vector.broadcast %c1_i32 : i32 to vector<1x128xi32>
    %12 = arith.cmpi eq, %0, %11 : vector<1x128xi32>
    %13 = vector.shape_cast %12 : vector<1x128xi1> to vector<1x128xi1>
    %14 = vector.broadcast %13 : vector<1x128xi1> to vector<32x128xi1>
    %15 = vector.shape_cast %10 : vector<32x1xf32> to vector<32x1xf32>
    %16 = vector.broadcast %15 : vector<32x1xf32> to vector<32x128xf32>
    %17 = arith.select %14, %16, %9 : vector<32x128xi1>, vector<32x128xf32>
    %c0_4 = arith.constant 0 : index
    %c2 = arith.constant 2 : index
    %18 = vector.load %arg2[%c0_4, %c2] : memref<32x8xf32, #tpu.memory_space<vmem>>, vector<32x1xf32>
    %c2_i32 = arith.constant 2 : i32
    %19 = vector.broadcast %c2_i32 : i32 to vector<1x128xi32>
    %20 = arith.cmpi eq, %0, %19 : vector<1x128xi32>
    %21 = vector.shape_cast %20 : vector<1x128xi1> to vector<1x128xi1>
    %22 = vector.broadcast %21 : vector<1x128xi1> to vector<32x128xi1>
    %23 = vector.shape_cast %18 : vector<32x1xf32> to vector<32x1xf32>
    %24 = vector.broadcast %23 : vector<32x1xf32> to vector<32x128xf32>
    %25 = arith.select %22, %24, %17 : vector<32x128xi1>, vector<32x128xf32>
    %c0_5 = arith.constant 0 : index
    %c3 = arith.constant 3 : index
    %26 = vector.load %arg2[%c0_5, %c3] : memref<32x8xf32, #tpu.memory_space<vmem>>, vector<32x1xf32>
    %c3_i32 = arith.constant 3 : i32
    %27 = vector.broadcast %c3_i32 : i32 to vector<1x128xi32>
    %28 = arith.cmpi eq, %0, %27 : vector<1x128xi32>
    %29 = vector.shape_cast %28 : vector<1x128xi1> to vector<1x128xi1>
    %30 = vector.broadcast %29 : vector<1x128xi1> to vector<32x128xi1>
    %31 = vector.shape_cast %26 : vector<32x1xf32> to vector<32x1xf32>
    %32 = vector.broadcast %31 : vector<32x1xf32> to vector<32x128xf32>
    %33 = arith.select %30, %32, %25 : vector<32x128xi1>, vector<32x128xf32>
    %c0_6 = arith.constant 0 : index
    %c4 = arith.constant 4 : index
    %34 = vector.load %arg2[%c0_6, %c4] : memref<32x8xf32, #tpu.memory_space<vmem>>, vector<32x1xf32>
    %c4_i32 = arith.constant 4 : i32
    %35 = vector.broadcast %c4_i32 : i32 to vector<1x128xi32>
    %36 = arith.cmpi eq, %0, %35 : vector<1x128xi32>
    %37 = vector.shape_cast %36 : vector<1x128xi1> to vector<1x128xi1>
    %38 = vector.broadcast %37 : vector<1x128xi1> to vector<32x128xi1>
    %39 = vector.shape_cast %34 : vector<32x1xf32> to vector<32x1xf32>
    %40 = vector.broadcast %39 : vector<32x1xf32> to vector<32x128xf32>
    %41 = arith.select %38, %40, %33 : vector<32x128xi1>, vector<32x128xf32>
    %c0_7 = arith.constant 0 : index
    %c5 = arith.constant 5 : index
    %42 = vector.load %arg2[%c0_7, %c5] : memref<32x8xf32, #tpu.memory_space<vmem>>, vector<32x1xf32>
    %c5_i32 = arith.constant 5 : i32
    %43 = vector.broadcast %c5_i32 : i32 to vector<1x128xi32>
    %44 = arith.cmpi eq, %0, %43 : vector<1x128xi32>
    %45 = vector.shape_cast %44 : vector<1x128xi1> to vector<1x128xi1>
    %46 = vector.broadcast %45 : vector<1x128xi1> to vector<32x128xi1>
    %47 = vector.shape_cast %42 : vector<32x1xf32> to vector<32x1xf32>
    %48 = vector.broadcast %47 : vector<32x1xf32> to vector<32x128xf32>
    %49 = arith.select %46, %48, %41 : vector<32x128xi1>, vector<32x128xf32>
    %c0_8 = arith.constant 0 : index
    %c6 = arith.constant 6 : index
    %50 = vector.load %arg2[%c0_8, %c6] : memref<32x8xf32, #tpu.memory_space<vmem>>, vector<32x1xf32>
    %c6_i32 = arith.constant 6 : i32
    %51 = vector.broadcast %c6_i32 : i32 to vector<1x128xi32>
    %52 = arith.cmpi eq, %0, %51 : vector<1x128xi32>
    %53 = vector.shape_cast %52 : vector<1x128xi1> to vector<1x128xi1>
    %54 = vector.broadcast %53 : vector<1x128xi1> to vector<32x128xi1>
    %55 = vector.shape_cast %50 : vector<32x1xf32> to vector<32x1xf32>
    %56 = vector.broadcast %55 : vector<32x1xf32> to vector<32x128xf32>
    %57 = arith.select %54, %56, %49 : vector<32x128xi1>, vector<32x128xf32>
    %c0_9 = arith.constant 0 : index
    %c7 = arith.constant 7 : index
    %58 = vector.load %arg2[%c0_9, %c7] : memref<32x8xf32, #tpu.memory_space<vmem>>, vector<32x1xf32>
    %c7_i32 = arith.constant 7 : i32
    %59 = vector.broadcast %c7_i32 : i32 to vector<1x128xi32>
    %60 = arith.cmpi eq, %0, %59 : vector<1x128xi32>
    %61 = vector.shape_cast %60 : vector<1x128xi1> to vector<1x128xi1>
    %62 = vector.broadcast %61 : vector<1x128xi1> to vector<32x128xi1>
    %63 = vector.shape_cast %58 : vector<32x1xf32> to vector<32x1xf32>
    %64 = vector.broadcast %63 : vector<32x1xf32> to vector<32x128xf32>
    %65 = arith.select %62, %64, %57 : vector<32x128xi1>, vector<32x128xf32>
    %cst_10 = arith.constant 9.99999996E-13 : f32
    %66 = vector.broadcast %cst_10 : f32 to vector<32x128xf32>
    %67 = arith.addf %65, %66 : vector<32x128xf32>
    %68 = vector.extract_strided_slice %67 {offsets = [0, 0], sizes = [8, 128], strides = [1, 1]} : vector<32x128xf32> to vector<8x128xf32>
    %69 = vector.extract_strided_slice %67 {offsets = [8, 0], sizes = [8, 128], strides = [1, 1]} : vector<32x128xf32> to vector<8x128xf32>
    %70 = arith.addf %68, %69 : vector<8x128xf32>
    %71 = vector.extract_strided_slice %67 {offsets = [16, 0], sizes = [8, 128], strides = [1, 1]} : vector<32x128xf32> to vector<8x128xf32>
    %72 = arith.addf %70, %71 : vector<8x128xf32>
    %73 = vector.extract_strided_slice %67 {offsets = [24, 0], sizes = [8, 128], strides = [1, 1]} : vector<32x128xf32> to vector<8x128xf32>
    %74 = arith.addf %72, %73 : vector<8x128xf32>
    %75 = tpu.reciprocal %74 : vector<8x128xf32> -> vector<8x128xf32>
    %76 = vector.extract_strided_slice %67 {offsets = [0, 0], sizes = [8, 128], strides = [1, 1]} : vector<32x128xf32> to vector<8x128xf32>
    %77 = arith.mulf %76, %75 : vector<8x128xf32>
    %78 = vector.extract_strided_slice %67 {offsets = [8, 0], sizes = [8, 128], strides = [1, 1]} : vector<32x128xf32> to vector<8x128xf32>
    %79 = arith.mulf %78, %75 : vector<8x128xf32>
    %80 = vector.extract_strided_slice %67 {offsets = [16, 0], sizes = [8, 128], strides = [1, 1]} : vector<32x128xf32> to vector<8x128xf32>
    %81 = arith.mulf %80, %75 : vector<8x128xf32>
    %82 = vector.extract_strided_slice %67 {offsets = [24, 0], sizes = [8, 128], strides = [1, 1]} : vector<32x128xf32> to vector<8x128xf32>
    %83 = arith.mulf %82, %75 : vector<8x128xf32>
    %84 = math.log %74 : vector<8x128xf32>
    %85 = tpu.concatenate %77, %79, %81, %83, %84 in 0 : vector<8x128xf32>, vector<8x128xf32>, vector<8x128xf32>, vector<8x128xf32>, vector<8x128xf32> -> vector<40x128xf32>
    %c0_11 = arith.constant 0 : index
    %c0_12 = arith.constant 0 : index
    %86 = vector.load %arg3[%c0_11, %c0_12] : memref<40x128xf32, #tpu.memory_space<vmem>>, vector<40x128xf32>
    tpu.vector_store %arg3[%c0_11, %c0_12], %85 {strides = array<i32>} : memref<40x128xf32, #tpu.memory_space<vmem>>, vector<40x128xf32>,
    return
  }
  func.func @transform_0(%arg0: i32) -> (i32, i32) {
    %c0_i32 = arith.constant 0 : i32
    %c0_i32_0 = arith.constant 0 : i32
    return %c0_i32, %arg0 : i32, i32
  }
  func.func @transform_1(%arg0: i32) -> (i32, i32) {
    %c0_i32 = arith.constant 0 : i32
    %c0_i32_0 = arith.constant 0 : i32
    %c0_i32_1 = arith.constant 0 : i32
    return %c0_i32, %c0_i32_0 : i32, i32
  }
  func.func @transform_2(%arg0: i32) -> (i32, i32) {
    %c0_i32 = arith.constant 0 : i32
    %c0_i32_0 = arith.constant 0 : i32
    return %c0_i32, %arg0 : i32, i32
  }
}

</mosaic_0001>

<bundles_post_ra>
// kernel: cgmm_layer0_forward.1
= control target key start
LH: loop header
LB: loop body
LE: loop exit
PB: predicated region body
PF: predicated region fallthrough
CT: control target
= control target key end

     0   :  { %v294_v0 = vmov 0   ;;  %v295_v5 = vmov 1   ;;  %v296_v6 = vmov 2   ;;  %v297_v7 = vmov 3   ;;  %s473_s1 = inlined_call_operand.vmem [shape: f32[32,8], index: 1, kind: input, shape index: {}]   ;;  %s474_s0 = inlined_call_operand.vmem [shape: s32[1,128], index: 0, kind: input, shape index: {}]   ;;  %s475_s2 = inlined_call_operand.vmem [shape: f32[40,128], index: 2, kind: output, shape index: {}]  }
   0x1   :  { %268 = vset.pattern.permute.xlu1 %v294_v0  ;;  %267 = vset.pattern.permute.xlu0 %v294_v0  ;;  %v14_v1 = vld [vmem:[%s473_s1 + $0x10] sm:$0xff]  ;;  %v12_v2 = vld [vmem:[%s473_s1] sm:$0xff]  ;;  %v15_v3 = vld [vmem:[%s473_s1 + $0x18] sm:$0xff]  ;;  %v298_v8 = vmov 6   ;;  %v299_v9 = vmov 4   ;;  %v300_v10 = vmov 5   ;;  %v18_v12 = vlaneseq }
   0x2   :  { %35 = vperm.xlu1 %268, %v14_v1   ;;  %25 = vperm.xlu0 %267, %v12_v2   ;;  %v13_v4 = vld [vmem:[%s473_s1 + $0x8] sm:$0xff]  ;;  %v301_v11 = vmov 7   ;;  %v334_v13 = vld [vmem:[%s474_s0] sm:$0x1] }
   0x3   :  { %v19_v14 = vshrl.u32 %v18_v12, 7  ;;  %vm16_vm0 = vcmp.eq.s32.totalorder %v334_v13, 0  ;;  %vm47_vm2 = vcmp.eq.s32.totalorder %v334_v13, 1  ;;  %vm74_vm3 = vcmp.eq.s32.totalorder %v334_v13, 2 }
   0x4   :  { %v17_v16 = vsel %vm16_vm0, 1, %v294_v0  ;;  %v48_v25 = vsel %vm47_vm2, 1, %v294_v0  ;;  %v75_v34 = vsel %vm74_vm3, 1, %v294_v0  ;;  %vm101_vm6 = vcmp.eq.s32.totalorder %v334_v13, 3 }
   0x5   :  { %v337_v15 = vsub.s32 0, %v19_v14  ;;  %v102_v43 = vsel %vm101_vm6, 1, %v294_v0  ;;  %vm128_vm8 = vcmp.eq.s32.totalorder %v334_v13, 4  ;;  %vm155_vm9 = vcmp.eq.s32.totalorder %v334_v13, 5 }
   0x6   :  { %40 = vperm.xlu1 %268, %v15_v3   ;;  %30 = vperm.xlu0 %267, %v13_v4   ;;  %v129_v51 = vsel %vm128_vm8, 1, %v294_v0  ;;  %v156_v53 = vsel %vm155_vm9, 1, %v294_v0  ;;  %vm182_vm12 = vcmp.eq.s32.totalorder %v334_v13, 6  ;;  %vm209_vm13 = vcmp.eq.s32.totalorder %v334_v13, 7 }
   0x7   :  { %v21_v17 = vrot.slane %v17_v16, %v337_v15  ;;  %v52_v27 = vrot.slane %v48_v25, %v337_v15  ;;  %v79_v36 = vrot.slane %v75_v34, %v337_v15  ;;  %v106_v45 = vrot.slane %v102_v43, %v337_v15 }
   0x8   :  { %v133_v55 = vrot.slane %v129_v51, %v337_v15  ;;  %v160_v57 = vrot.slane %v156_v53, %v337_v15  ;;  %v210_v12 = vsel %vm209_vm13, 1, %v294_v0 }
   0x9   :  { %vm341_vm1 = vcmp.eq.s32.totalorder %v21_v17, 1  ;;  %vm353_vm4 = vcmp.eq.s32.totalorder %v52_v27, 1  ;;  %vm363_vm5 = vcmp.eq.s32.totalorder %v79_v36, 1  ;;  %vm372_vm7 = vcmp.eq.s32.totalorder %v106_v45, 1 }
   0xa   :  { %270 = vset.pattern.permute.xlu1 %v295_v5  ;;  %269 = vset.pattern.permute.xlu0 %v295_v5  ;;  %vm386_vm10 = vcmp.eq.s32.totalorder %v133_v55, 1  ;;  %vm390_vm11 = vcmp.eq.s32.totalorder %v160_v57, 1 }
   0xb   :  { %59 = vperm.xlu1 %270, %v13_v4   ;;  %55 = vperm.xlu0 %269, %v12_v2  }
   0xf   :  { %63 = vperm.xlu1 %270, %v14_v1   ;;  %67 = vperm.xlu0 %269, %v15_v3  }
  0x13   :  { %271 = vset.pattern.permute.xlu1 %v296_v6  ;;  %272 = vset.pattern.permute.xlu0 %v296_v6 }
  0x14   :  { %82 = vperm.xlu1 %271, %v12_v2   ;;  %86 = vperm.xlu0 %272, %v13_v4  }
  0x18   :  { %273 = vset.pattern.permute.xlu1 %v297_v7  ;;  %90 = vperm.xlu0 %272, %v14_v1  }
  0x19   :  { %109 = vperm.xlu1 %273, %v12_v2  }
  0x1c   :  { %279 = vset.pattern.permute.xlu0 %v298_v8 }
  0x1d   :  { %113 = vperm.xlu1 %273, %v13_v4   ;;  %190 = vperm.xlu0 %279, %v12_v2  }
  0x21   :  { %274 = vset.pattern.permute.xlu1 %v299_v9  ;;  %280 = vset.pattern.permute.xlu0 %v300_v10 }
  0x22   :  { %136 = vperm.xlu1 %274, %v12_v2   ;;  %167 = vperm.xlu0 %280, %v13_v4  }
  0x26   :  { %275 = vset.pattern.permute.xlu1 %v297_v7  ;;  %171 = vperm.xlu0 %280, %v14_v1  }
  0x27   :  { %117 = vperm.xlu1 %275, %v14_v1  }
  0x2a   :  { %283 = vset.pattern.permute.xlu0 %v299_v9 }
  0x2b   :  { %276 = vset.pattern.permute.xlu1 %v300_v10  ;;  %140 = vperm.xlu0 %283, %v13_v4  }
  0x2c   :  { %163 = vperm.xlu1 %276, %v12_v2  }
  0x2f   :  { %148 = vperm.xlu0 %283, %v15_v3  }
  0x30   :  { %277 = vset.pattern.permute.xlu1 %v296_v6 }
  0x31   :  { %94 = vperm.xlu1 %277, %v15_v3  }
  0x33   :  { %287 = vset.pattern.permute.xlu0 %v301_v11 }
  0x34   :  { %225 = vperm.xlu0 %287, %v14_v1  }
  0x35   :  { %278 = vset.pattern.permute.xlu1 %v299_v9 }
  0x36   :  { %144 = vperm.xlu1 %278, %v14_v1  }
  0x3a   :  { %281 = vset.pattern.permute.xlu1 %v298_v8 }
  0x3b   :  { %194 = vperm.xlu1 %281, %v13_v4  }
  0x3f   :  { %282 = vset.pattern.permute.xlu1 %v297_v7  ;;  %v183_v7 = vsel %vm182_vm12, 1, %v294_v0 }
  0x40   :  { %121 = vperm.xlu1 %282, %v15_v3   ;;  %v187_v16 = vrot.slane %v183_v7, %v337_v15 }
  0x42   :  { %vm432_vm14 = vcmp.eq.s32.totalorder %v187_v16, 1 }
  0x44   :  { %284 = vset.pattern.permute.xlu1 %v301_v11 }
  0x45   :  { %217 = vperm.xlu1 %284, %v12_v2  }
  0x49   :  { %221 = vperm.xlu1 %284, %v13_v4  }
  0x4d   :  { %285 = vset.pattern.permute.xlu1 %v298_v8 }
  0x4e   :  { %198 = vperm.xlu1 %285, %v14_v1  }
  0x52   :  { %286 = vset.pattern.permute.xlu1 %v300_v10 }
  0x53   :  { %175 = vperm.xlu1 %286, %v15_v3  }
  0x57   :  { %288 = vset.pattern.permute.xlu1 %v298_v8 }
  0x58   :  { %202 = vperm.xlu1 %288, %v15_v3  }
  0x5c   :  { %289 = vset.pattern.permute.xlu1 %v301_v11 }
  0x5d   :  { %229 = vperm.xlu1 %289, %v15_v3  }
  0x81   :  { %v36_v19 = vpop.permute.xlu1 %35  ;;  %v26_v20 = vpop.permute.xlu0 %25 }
  0x82   :  { %v45_v21 = vsel %vm341_vm1, %v36_v19, 0.0  ;;  %v43_v3 = vsel %vm341_vm1, %v26_v20, 0.0  ;;  %v214_v20 = vrot.slane %v210_v12, %v337_v15 }
  0x84   :  { %vm438_vm15 = vcmp.eq.s32.totalorder %v214_v20, 1 }
  0x85   :  { %v41_v22 = vpop.permute.xlu1 %40  ;;  %v31_v23 = vpop.permute.xlu0 %30 }
  0x86   :  { %v46_v24 = vsel %vm341_vm1, %v41_v22, 0.0  ;;  %v44_v4 = vsel %vm341_vm1, %v31_v23, 0.0 }
  0x8a   :  { %v60_v26 = vpop.permute.xlu1 %59  ;;  %v56_v28 = vpop.permute.xlu0 %55 }
  0x8b   :  { %v71_v9 = vsel %vm353_vm4, %v60_v26, %v44_v4  ;;  %v70_v10 = vsel %vm353_vm4, %v56_v28, %v43_v3 }
  0x8e   :  { %v64_v30 = vpop.permute.xlu1 %63  ;;  %v68_v31 = vpop.permute.xlu0 %67 }
  0x8f   :  { %v72_v32 = vsel %vm353_vm4, %v64_v30, %v45_v21  ;;  %v73_v33 = vsel %vm353_vm4, %v68_v31, %v46_v24 }
  0x93   :  { %v83_v35 = vpop.permute.xlu1 %82  ;;  %v87_v37 = vpop.permute.xlu0 %86 }
  0x94   :  { %v98_v13 = vsel %vm363_vm5, %v87_v37, %v71_v9  ;;  %v97_v17 = vsel %vm363_vm5, %v83_v35, %v70_v10 }
  0x97   :  { %v91_v39 = vpop.permute.xlu0 %90 }
  0x98   :  { %v99_v40 = vsel %vm363_vm5, %v91_v39, %v72_v32  ;;  %v110_v41 = vpop.permute.xlu1 %109 }
  0x99   :  { %v124_v0 = vsel %vm372_vm7, %v110_v41, %v97_v17 }
  0x9c   :  { %v114_v42 = vpop.permute.xlu1 %113  ;;  %v191_v49 = vpop.permute.xlu0 %190 }
  0x9d   :  { %v125_v14 = vsel %vm372_vm7, %v114_v42, %v98_v13 }
  0xa1   :  { %v137_v44 = vpop.permute.xlu1 %136  ;;  %v168_v52 = vpop.permute.xlu0 %167 }
  0xa2   :  { %v151_v21 = vsel %vm386_vm10, %v137_v44, %v124_v0 }
  0xa5   :  { %v172_v58 = vpop.permute.xlu0 %171 }
  0xa6   :  { %v118_v47 = vpop.permute.xlu1 %117 }
  0xa7   :  { %v126_v48 = vsel %vm372_vm7, %v118_v47, %v99_v40 }
  0xaa   :  { %v141_v1 = vpop.permute.xlu0 %140 }
  0xab   :  { %v164_v50 = vpop.permute.xlu1 %163  ;;  %v152_v18 = vsel %vm386_vm10, %v141_v1, %v125_v14 }
  0xac   :  { %v178_v22 = vsel %vm390_vm11, %v164_v50, %v151_v21  ;;  %v179_v23 = vsel %vm390_vm11, %v168_v52, %v152_v18 }
  0xad   :  { %v205_v28 = vsel %vm432_vm14, %v191_v49, %v178_v22 }
  0xae   :  { %v149_v5 = vpop.permute.xlu0 %148 }
  0xb0   :  { %v95_v54 = vpop.permute.xlu1 %94 }
  0xb1   :  { %v100_v56 = vsel %vm363_vm5, %v95_v54, %v73_v33 }
  0xb3   :  { %v226_v31 = vpop.permute.xlu0 %225 }
  0xb5   :  { %v145_v60 = vpop.permute.xlu1 %144 }
  0xb6   :  { %v153_v62 = vsel %vm386_vm10, %v145_v60, %v126_v48 }
  0xb7   :  { %v180_v63 = vsel %vm390_vm11, %v172_v58, %v153_v62 }
  0xba   :  { %v195_v2 = vpop.permute.xlu1 %194 }
  0xbb   :  { %v206_v25 = vsel %vm432_vm14, %v195_v2, %v179_v23 }
  0xbf   :  { %v122_v6 = vpop.permute.xlu1 %121 }
  0xc0   :  { %v127_v8 = vsel %vm372_vm7, %v122_v6, %v100_v56 }
  0xc1   :  { %v154_v11 = vsel %vm386_vm10, %v149_v5, %v127_v8 }
  0xc4   :  { %v218_v19 = vpop.permute.xlu1 %217 }
  0xc5   :  { %v232_v29 = vsel %vm438_vm15, %v218_v19, %v205_v28 }
  0xc6   :  { %v236_v33 = vadd.f32 1e-12, %v232_v29 }
  0xc8   :  { %v222_v26 = vpop.permute.xlu1 %221 }
  0xc9   :  { %v233_v27 = vsel %vm438_vm15, %v222_v26, %v206_v25 }
  0xca   :  { %v237_v30 = vadd.f32 1e-12, %v233_v27 }
  0xcc   :  { %v240_v36 = vadd.f32 %v237_v30, %v236_v33 }
  0xcd   :  { %v199_v32 = vpop.permute.xlu1 %198 }
  0xce   :  { %v207_v34 = vsel %vm432_vm14, %v199_v32, %v180_v63 }
  0xcf   :  { %v234_v35 = vsel %vm438_vm15, %v226_v31, %v207_v34 }
  0xd0   :  { %v238_v37 = vadd.f32 1e-12, %v234_v35 }
  0xd2   :  { %v241_v38 = vadd.f32 %v240_v36, %v238_v37  ;;  %v176_v39 = vpop.permute.xlu1 %175 }
  0xd3   :  { %v181_v40 = vsel %vm390_vm11, %v176_v39, %v154_v11 }
  0xd7   :  { %v203_v41 = vpop.permute.xlu1 %202 }
  0xd8   :  { %v208_v42 = vsel %vm432_vm14, %v203_v41, %v181_v40 }
  0xdc   :  { %v230_v43 = vpop.permute.xlu1 %229 }
  0xdd   :  { %v235_v44 = vsel %vm438_vm15, %v230_v43, %v208_v42 }
  0xde   :  { %v239_v45 = vadd.f32 1e-12, %v235_v44 }
  0xe0   :  { %v242_v46 = vadd.f32 %v241_v38, %v239_v45 }
  0xe2   :  { %290 = vrcp.f32 %v242_v46 }
  0xe3   :  { %292 = vlog2.f32 %v242_v46 }
  0xec   :  { %v291_v47 = vpop.eup %290 }
  0xed   :  { %v293_v48 = vpop.eup %292  ;;  %v244_v49 = vmul.f32 %v291_v47, %v236_v33  ;;  %v245_v50 = vmul.f32 %v291_v47, %v237_v30  ;;  %v246_v51 = vmul.f32 %v291_v47, %v238_v37  ;;  %v247_v52 = vmul.f32 %v291_v47, %v239_v45 }
  0xee   :  { %v249_v53 = vmul.f32 0.6931472, %v293_v48 }
  0xef   :  { %250 = vst [vmem:[%s475_s2] sm:$0xff] %v244_v49  ;;  %251 = vst [vmem:[%s475_s2 + $0x8] sm:$0xff] %v245_v50 }
  0xf0   :  { %252 = vst [vmem:[%s475_s2 + $0x10] sm:$0xff] %v246_v51  ;;  %253 = vst [vmem:[%s475_s2 + $0x18] sm:$0xff] %v247_v52 }
  0xf1   :  { %254 = vst [vmem:[%s475_s2 + $0x20] sm:$0xff] %v249_v53 }

</bundles_post_ra>
